<compile_context>
chip_gen: v5e
topology: v5e:2x2
jax: 0.10.0
libtpu: 0.0.40
codegen_flags: <defaults>
</compile_context>

<pallas_src>
import numpy as np
import jax
import jax.numpy as jnp
from jax.experimental import pallas as pl
from jax.experimental.pallas import tpu as pltpu


def _round_up(x, m):
    return ((x + m - 1) // m) * m


def _deconv_gemm_kernel(x_ref, w_ref, b_ref, o_ref):
    # x_ref: (Cin, tm)   w_ref: (4*Cout, Cin)   b_ref: (4*Cout, 1)
    # o_ref: (4*Cout, tm)
    acc = jnp.dot(w_ref[...], x_ref[...], preferred_element_type=jnp.float32)
    o_ref[...] = (acc + b_ref[...]).astype(o_ref.dtype)


def upsample_conv_transpose2d(x_nchw, weight, bias, *, tm=512, mxu_dtype=None):
    """ConvTranspose2d(kernel_size=2, stride=2) forward.

    x_nchw : (N, Cin, H, W) float32
    weight : (Cin, Cout, 2, 2) float32   (PyTorch ConvTranspose2d layout)
    bias   : (Cout,) float32
    tm     : pixel tile on the lane axis; multiple of 128, sweep 512-2048.
    mxu_dtype : optional narrower dtype (e.g. jnp.bfloat16) for the MXU inputs;
        accumulation, bias add and output stay float32.
    returns: (N, Cout, 2H, 2W) float32
    """
    N, Cin, H, W = x_nchw.shape
    Cout = weight.shape[1]
    out_dtype = x_nchw.dtype
    M = N * H * W

    # ---- glue: cheap layout plumbing (no per-pixel channel shuffles) ----
    # channels-leading pixels: (N, Cin, H, W) -> (Cin, N*H*W). N is tiny, so
    # this is just a leading-axis swap of large contiguous (H*W) chunks.
    x_cm = jnp.transpose(x_nchw, (1, 0, 2, 3)).reshape(Cin, M)
    # (Cin, Cout, kH, kW) -> (kH, kW, Cout, Cin) -> (4*Cout, Cin);
    # row index = (ki*2 + kj)*Cout + co  (kpos-major, co-minor).
    w_cm = jnp.transpose(weight, (2, 3, 1, 0)).reshape(4 * Cout, Cin)
    # bias broadcast over the 4 kernel positions; kept in f32 for the VPU add.
    b_cm = jnp.tile(bias, (4,)).reshape(4 * Cout, 1).astype(jnp.float32)

    if mxu_dtype is not None:
        x_cm = x_cm.astype(mxu_dtype)
        w_cm = w_cm.astype(mxu_dtype)

    # ---- tile / grid selection: lane-dense tiles, arbitrary M supported ----
    tm = max(128, _round_up(min(tm, _round_up(M, 128)), 128))
    M_pad = _round_up(M, tm)
    if M_pad != M:
        x_cm = jnp.pad(x_cm, ((0, 0), (0, M_pad - M)))
    grid = (M_pad // tm,)

    # explicit scoped-VMEM budget: double-buffered x & out tiles + resident
    # weight/bias, with 2x margin.  Keeps a tm tuned on 128 MiB parts from
    # silently OOM-ing on v7x (64 MiB physical / 32 MiB scoped default).
    in_bytes = np.dtype(x_cm.dtype).itemsize
    out_bytes = np.dtype(out_dtype).itemsize
    vmem_bytes = (2 * tm * Cin * in_bytes
                  + 2 * tm * 4 * Cout * out_bytes
                  + 2 * (4 * Cout * Cin * in_bytes + 4 * Cout * 4))
    vmem_limit = int(min(max(2 * vmem_bytes + (1 << 20), 4 << 20), 32 << 20))

    y_flat = pl.pallas_call(
        _deconv_gemm_kernel,
        out_shape=jax.ShapeDtypeStruct((4 * Cout, M_pad), out_dtype),
        grid_spec=pltpu.PrefetchScalarGridSpec(
            num_scalar_prefetch=0,
            grid=grid,
            in_specs=[
                pl.BlockSpec((Cin, tm), lambda i: (0, i)),
                # weight/bias stay VMEM-resident (constant index_map).  Only if
                # Cin*4*Cout*bytes ever presses the VMEM budget should a K grid
                # axis ("arbitrary") with an f32 accumulator scratch be added;
                # for small channel counts it would just add per-step overhead.
                pl.BlockSpec((4 * Cout, Cin), lambda i: (0, 0)),
                pl.BlockSpec((4 * Cout, 1), lambda i: (0, 0)),
            ],
            out_specs=pl.BlockSpec((4 * Cout, tm), lambda i: (0, i)),
        ),
        compiler_params=pltpu.CompilerParams(
            dimension_semantics=("parallel",),   # shards the 1-D grid across TCs
            vmem_limit_bytes=vmem_limit,
        ),
    )(x_cm, w_cm, b_cm)

    # ---- glue: 2x2 interleave into the upsampled NCHW grid ----
    # TODO(synk): fusing this interleave into the kernel's output indexing
    # would need lane-strided (stride-2) stores into the (2H, 2W) plane, which
    # a rectangular BlockSpec cannot express cleanly; kept as one XLA pass.
    y = y_flat[:, :M].reshape(2, 2, Cout, N, H, W)   # (ki, kj, co, n, h, w)
    y = jnp.transpose(y, (3, 2, 4, 0, 5, 1))          # (n, co, h, ki, w, kj)
    return y.reshape(N, Cout, 2 * H, 2 * W)


def _reference(x_nchw, weight, bias):
    # direct einsum of the conv-transpose definition (for verification)
    # out[n, co, 2i+ki, 2j+kj] = sum_ci x[n,ci,i,j] * W[ci,co,ki,kj] + b[co]
    y = jnp.einsum("ncij,cokl->noikjl", x_nchw, weight)
    N, Cout, H, _, W, _ = y.shape
    return y.reshape(N, Cout, 2 * H, 2 * W) + bias[None, :, None, None]


if __name__ == "__main__":
    key = jax.random.PRNGKey(0)
    k_x, k_w, k_b = jax.random.split(key, 3)

    N, Cin, H, W = 2, 4, 16, 16
    Cout = 8

    x = jax.random.normal(k_x, (N, Cin, H, W), dtype=jnp.float32)
    # deterministic synthetic parameters (shapes match nn.ConvTranspose2d(Cin, Cout, 2, 2))
    weight = jax.random.normal(k_w, (Cin, Cout, 2, 2), dtype=jnp.float32) * 0.1
    bias = jax.random.normal(k_b, (Cout,), dtype=jnp.float32) * 0.1

    ref = _reference(x, weight, bias)

    # f32 path
    out = jax.block_until_ready(upsample_conv_transpose2d(x, weight, bias))
    assert out.shape == (N, Cout, 2 * H, 2 * W)
    assert jnp.allclose(out, ref, atol=1e-5, rtol=1e-5)

    # bf16 MXU-input path (f32 accumulate / bias add / output), looser tolerance.
    out_bf16 = jax.block_until_ready(
        upsample_conv_transpose2d(x, weight, bias, mxu_dtype=jnp.bfloat16))
    assert out_bf16.shape == (N, Cout, 2 * H, 2 * W)
    assert jnp.allclose(out_bf16, ref, atol=5e-2, rtol=5e-2)

    print("KERNEL_OK")
</pallas_src>

<mosaic_0001>
module attributes {stable_mosaic.version = 11 : i64} {
  func.func @_deconv_gemm_kernel(%arg0: i32, %arg1: memref<4x512xf32, #tpu.memory_space<vmem>>, %arg2: memref<32x4xf32, #tpu.memory_space<vmem>>, %arg3: memref<32x1xf32, #tpu.memory_space<vmem>>, %arg4: memref<32x512xf32, #tpu.memory_space<vmem>>) attributes {dimension_semantics = [#tpu.dimension_semantics<parallel>], iteration_bounds = array<i64: 1>, scalar_prefetch = 0 : i64, scratch_operands = 0 : i64, tpu.core_type = #tpu.core_type<tc>, window_params = [{transform_indices = @transform_0, window_bounds = array<i64: 4, 512>}, {pipeline_mode = #tpu.pipeline_mode<synchronous>, transform_indices = @transform_1, window_bounds = array<i64: 32, 4>}, {pipeline_mode = #tpu.pipeline_mode<synchronous>, transform_indices = @transform_2, window_bounds = array<i64: 32, 1>}, {transform_indices = @transform_3, window_bounds = array<i64: 32, 512>}]} {
    %c0 = arith.constant 0 : index
    %c0_0 = arith.constant 0 : index
    %0 = vector.load %arg2[%c0, %c0_0] : memref<32x4xf32, #tpu.memory_space<vmem>>, vector<32x4xf32>
    %c0_1 = arith.constant 0 : index
    %c0_2 = arith.constant 0 : index
    %1 = vector.load %arg1[%c0_1, %c0_2] : memref<4x512xf32, #tpu.memory_space<vmem>>, vector<4x512xf32>
    %cst = arith.constant dense<0.000000e+00> : vector<32x512xf32>
    %2 = tpu.matmul %0, %1, %cst {dimension_numbers = #tpu.dot_dimension_numbers<[1], [0], [0], [1], [0, 0, 1, 1], [], []>} : vector<32x4xf32>, vector<4x512xf32>, vector<32x512xf32> -> vector<32x512xf32>
    %c0_3 = arith.constant 0 : index
    %c0_4 = arith.constant 0 : index
    %3 = vector.load %arg3[%c0_3, %c0_4] : memref<32x1xf32, #tpu.memory_space<vmem>>, vector<32x1xf32>
    %4 = vector.broadcast %3 : vector<32x1xf32> to vector<32x512xf32>
    %5 = arith.addf %2, %4 : vector<32x512xf32>
    %c0_5 = arith.constant 0 : index
    %c0_6 = arith.constant 0 : index
    %6 = vector.load %arg4[%c0_5, %c0_6] : memref<32x512xf32, #tpu.memory_space<vmem>>, vector<32x512xf32>
    tpu.vector_store %arg4[%c0_5, %c0_6], %5 {strides = array<i32>} : memref<32x512xf32, #tpu.memory_space<vmem>>, vector<32x512xf32>,
    return
  }
  func.func @transform_0(%arg0: i32) -> (i32, i32) {
    %c0_i32 = arith.constant 0 : i32
    %c0_i32_0 = arith.constant 0 : i32
    return %c0_i32, %arg0 : i32, i32
  }
  func.func @transform_1(%arg0: i32) -> (i32, i32) {
    %c0_i32 = arith.constant 0 : i32
    %c0_i32_0 = arith.constant 0 : i32
    %c0_i32_1 = arith.constant 0 : i32
    return %c0_i32, %c0_i32_0 : i32, i32
  }
  func.func @transform_2(%arg0: i32) -> (i32, i32) {
    %c0_i32 = arith.constant 0 : i32
    %c0_i32_0 = arith.constant 0 : i32
    %c0_i32_1 = arith.constant 0 : i32
    return %c0_i32, %c0_i32_0 : i32, i32
  }
  func.func @transform_3(%arg0: i32) -> (i32, i32) {
    %c0_i32 = arith.constant 0 : i32
    %c0_i32_0 = arith.constant 0 : i32
    return %c0_i32, %arg0 : i32, i32
  }
}

</mosaic_0001>

<bundles_post_ra>
// kernel: tpu_custom_call.1
= control target key start
LH: loop header
LB: loop body
LE: loop exit
PB: predicated region body
PF: predicated region fallthrough
CT: control target
= control target key end

     0   :  { %v278_v2 = vmov 0   ;;  %s351_s0 = inlined_call_operand.vmem [shape: f32[4,512], index: 0, kind: input, shape index: {}]   ;;  %s352_s1 = inlined_call_operand.vmem [shape: f32[32,4], index: 1, kind: input, shape index: {}]   ;;  %s353_s2 = inlined_call_operand.vmem [shape: f32[32,1], index: 2, kind: input, shape index: {}]   ;;  %s354_s3 = inlined_call_operand.hbm [shape: f32[32,512], index: 3, kind: output, shape index: {}]  }
   0x1   :  { %v19_v0 = vld [vmem:[%s351_s0] sm:$0xff]  ;;  %v20_v1 = vld [vmem:[%s351_s0 + $0x8] sm:$0xff]  ;;  %250 = vset.pattern.permute.xlu0 %v278_v2  ;;  %251 = vset.pattern.permute.xlu1 %v278_v2 }
   0x2   :  { %47 = vst [vmem:[#allocation1] ss:$2 sm:$0xff] %v19_v0  ;;  %v21_v3 = vld [vmem:[%s353_s2] sm:$0xff] }
   0x3   :  { %49 = vst [vmem:[#allocation1 + $0x10] ss:$2 sm:$0xff] %v20_v1  ;;  %27 = vperm.xlu0 %250, %v21_v3  }
   0x4   :  { %8 = vsyncpa [#allocation3], 0  ;;  %v23_v4 = vld [vmem:[%s353_s2 + $0x10] sm:$0xff]  ;;  %vm67_vm0 = vcmask 1043456   ;;  %v15_v5 = vld [vmem:[%s352_s1] sm:$0xff]  ;;  %vm54_vm1 = vcmask 31744  }
   0x5   :  { %37 = vperm.xlu1 %251, %v23_v4   ;;  %v22_v10 = vld [vmem:[%s353_s2 + $0x8] sm:$0xff]  ;;  %v24_v11 = vld [vmem:[%s353_s2 + $0x18] sm:$0xff]  ;;  %v17_v13 = vld [vmem:[%s352_s1 + $0x10] sm:$0xff]  ;;  %s214_s6 = sshll.u32 %s354_s3, 4  ;;  %s280_s7 = smov 512   ;;  %s215_s6 = int_to_ptr.hbm [resolvable:$true] %s214_s6 }
   0x6   :  { %v16_v12 = vld [vmem:[%s352_s1 + $0x8] sm:$0xff]  ;;  %v18_v14 = vld [vmem:[%s352_s1 + $0x18] sm:$0xff]  ;;  %s279_s1 = smov [#allocation2]   ;;  %s281_s8 = smov 32  }
   0x7   :  { %s212_s30 = sshll.u32 %s279_s1, 4  ;;  %s213_s30 = int_to_ptr.vmem [resolvable:$true] %s212_s30 }
   0x9   :  { %v50_v6 = vld.sshfl [vmem:[#allocation1] sm:$0xff pattern:$0x75316420]  ;;  %v51_v7 = vld.sshfl [vmem:[#allocation1 + $0x8] sm:$0xff pattern:$0x75316420] }
   0xa   :  { %226 = vmatpush.msk.msra.mxu0 %vm67_vm0, %v50_v6  ;;  %231 = vmatpush.msk.msra.mxu1 %vm67_vm0, %v51_v7  ;;  %v52_v8 = vld.sshfl [vmem:[#allocation1 + $0x10] sm:$0xff pattern:$0x75316420]  ;;  %v53_v9 = vld.sshfl [vmem:[#allocation1 + $0x18] sm:$0xff pattern:$0x75316420] }
   0xb   :  { %236 = vmatpush.msk.msra.mxu2 %vm67_vm0, %v52_v8  ;;  %241 = vmatpush.msk.msra.mxu3 %vm67_vm0, %v53_v9 }
   0xc   :  { %227 = vmatmul.msk.f32.vlgmr.msra.gmra.mxu0 %vm54_vm1, %v15_v5  ;;  %232 = vmatmul.msk.f32.vlgmr.msra.gmra.mxu1 %vm54_vm1, %v15_v5 }
   0xd   :  { %237 = vmatmul.msk.f32.vlgmr.msra.gmra.mxu2 %vm54_vm1, %v15_v5  ;;  %242 = vmatmul.msk.f32.vlgmr.msra.gmra.mxu3 %vm54_vm1, %v15_v5 }
   0xe   :  { %32 = vperm.xlu0 %250, %v22_v10   ;;  %42 = vperm.xlu1 %251, %v24_v11  }
  0x14   :  { %228 = vmatmul.msk.f32.gmra.mxu0 %vm54_vm1, %v16_v12  ;;  %233 = vmatmul.msk.f32.gmra.mxu1 %vm54_vm1, %v16_v12 }
  0x15   :  { %238 = vmatmul.msk.f32.gmra.mxu2 %vm54_vm1, %v16_v12  ;;  %243 = vmatmul.msk.f32.gmra.mxu3 %vm54_vm1, %v16_v12 }
  0x1c   :  { %229 = vmatmul.msk.f32.gmra.mxu0 %vm54_vm1, %v17_v13  ;;  %234 = vmatmul.msk.f32.gmra.mxu1 %vm54_vm1, %v17_v13 }
  0x1d   :  { %239 = vmatmul.msk.f32.gmra.mxu2 %vm54_vm1, %v17_v13  ;;  %244 = vmatmul.msk.f32.gmra.mxu3 %vm54_vm1, %v17_v13 }
  0x24   :  { %230 = vmatmul.msk.f32.gmra.mxu0 %vm54_vm1, %v18_v14  ;;  %235 = vmatmul.msk.f32.gmra.mxu1 %vm54_vm1, %v18_v14 }
  0x25   :  { %240 = vmatmul.msk.f32.gmra.mxu2 %vm54_vm1, %v18_v14  ;;  %245 = vmatmul.msk.f32.gmra.mxu3 %vm54_vm1, %v18_v14 }
  0x75   :  { %v28_v15 = vpop.permute.xlu0 %27 }
  0x77   :  { %v38_v29 = vpop.permute.xlu1 %37 }
  0x80   :  { %v33_v20 = vpop.permute.xlu0 %32  ;;  %v43_v38 = vpop.permute.xlu1 %42 }
  0x89   :  { %v93_v16 = vpop.f32.mrf.mxu0  ;;  %v122_v17 = vpop.f32.mrf.mxu1 }
  0x8a   :  { %v94_v18 = vadd.f32 %v93_v16, %v28_v15  ;;  %v123_v19 = vadd.f32 %v122_v17, %v28_v15 }
  0x8c   :  { %192 = vst [vmem:[#allocation2] sm:$0xff] %v94_v18 }
  0x8d   :  { %193 = vst [vmem:[#allocation2 + $0x8] sm:$0xff] %v123_v19 }
  0x90   :  { %v151_v21 = vpop.f32.mrf.mxu2  ;;  %v180_v22 = vpop.f32.mrf.mxu3 }
  0x91   :  { %v152_v23 = vadd.f32 %v151_v21, %v28_v15  ;;  %v181_v24 = vadd.f32 %v180_v22, %v28_v15  ;;  %v96_v25 = vpop.f32.mrf.mxu0  ;;  %v125_v26 = vpop.f32.mrf.mxu1 }
  0x92   :  { %v97_v27 = vadd.f32 %v96_v25, %v33_v20  ;;  %v126_v28 = vadd.f32 %v125_v26, %v33_v20 }
  0x93   :  { %194 = vst [vmem:[#allocation2 + $0x10] sm:$0xff] %v152_v23 }
  0x94   :  { %195 = vst [vmem:[#allocation2 + $0x18] sm:$0xff] %v181_v24 }
  0x95   :  { %196 = vst [vmem:[#allocation2 + $0x20] sm:$0xff] %v97_v27 }
  0x96   :  { %197 = vst [vmem:[#allocation2 + $0x28] sm:$0xff] %v126_v28 }
  0x98   :  { %v154_v30 = vpop.f32.mrf.mxu2  ;;  %v183_v31 = vpop.f32.mrf.mxu3 }
  0x99   :  { %v155_v32 = vadd.f32 %v154_v30, %v33_v20  ;;  %v184_v33 = vadd.f32 %v183_v31, %v33_v20  ;;  %v99_v34 = vpop.f32.mrf.mxu0  ;;  %v128_v35 = vpop.f32.mrf.mxu1 }
  0x9a   :  { %v100_v36 = vadd.f32 %v99_v34, %v38_v29  ;;  %v129_v37 = vadd.f32 %v128_v35, %v38_v29 }
  0x9b   :  { %198 = vst [vmem:[#allocation2 + $0x30] sm:$0xff] %v155_v32 }
  0x9c   :  { %199 = vst [vmem:[#allocation2 + $0x38] sm:$0xff] %v184_v33 }
  0x9d   :  { %200 = vst [vmem:[#allocation2 + $0x40] sm:$0xff] %v100_v36 }
  0x9e   :  { %201 = vst [vmem:[#allocation2 + $0x48] sm:$0xff] %v129_v37 }
  0xa0   :  { %v157_v39 = vpop.f32.mrf.mxu2  ;;  %v186_v40 = vpop.f32.mrf.mxu3 }
  0xa1   :  { %v158_v41 = vadd.f32 %v157_v39, %v38_v29  ;;  %v187_v42 = vadd.f32 %v186_v40, %v38_v29  ;;  %v102_v43 = vpop.f32.mrf.mxu0  ;;  %v131_v44 = vpop.f32.mrf.mxu1 }
  0xa2   :  { %v103_v45 = vadd.f32 %v102_v43, %v43_v38  ;;  %v132_v46 = vadd.f32 %v131_v44, %v43_v38 }
  0xa3   :  { %202 = vst [vmem:[#allocation2 + $0x50] sm:$0xff] %v158_v41 }
  0xa4   :  { %203 = vst [vmem:[#allocation2 + $0x58] sm:$0xff] %v187_v42 }
  0xa5   :  { %204 = vst [vmem:[#allocation2 + $0x60] sm:$0xff] %v103_v45 }
  0xa6   :  { %205 = vst [vmem:[#allocation2 + $0x68] sm:$0xff] %v132_v46 }
  0xa8   :  { %v160_v47 = vpop.f32.mrf.mxu2  ;;  %v189_v48 = vpop.f32.mrf.mxu3 }
  0xa9   :  { %v161_v49 = vadd.f32 %v160_v47, %v43_v38  ;;  %v190_v50 = vadd.f32 %v189_v48, %v43_v38 }
  0xab   :  { %206 = vst [vmem:[#allocation2 + $0x70] sm:$0xff] %v161_v49 }
  0xac   :  { %207 = vst [vmem:[#allocation2 + $0x78] sm:$0xff] %v190_v50 }
  0xad   :  { %220 = dma.vmem_to_hbm [thread:$0]  %s213_s30, 2048, %s215_s6, [#allocation3], %s280_s7, %s280_s7, %s281_s8  }
  0xae   :  { %276 = dma.done.wait [#allocation3], 2048  }
  0xaf   :  { %277 = vsyncadd [#allocation3], 4294965248 }
  0xb0   :  { %225 = vsyncpa [#allocation3], 1 }

</bundles_post_ra>
